<compile_context>
chip_gen: v7x
topology: tpu7x:2x2x1
jax: 0.10.0
libtpu: 0.0.40
codegen_flags: <defaults>
</compile_context>

<pallas_src>
import functools

import jax
import jax.numpy as jnp
import numpy as np
from jax.experimental import pallas as pl
from jax.experimental.pallas import tpu as pltpu


def _soft_ce_kernel(logits_ref, target_ref, mask_ref, out_ref, *, softmax: bool):
    """One grid step = `block_b` sequences.  Emits the masked soft-CE partial sum."""
    x = logits_ref[...].astype(jnp.float32)   # (block_b, T, C)
    t = target_ref[...].astype(jnp.float32)   # (block_b, T, C)

    if softmax:
        # -(t * log_softmax(x)).sum(-1) == lse(x) * sum(t) - sum(t * x)
        m = jnp.max(x, axis=-1, keepdims=True)
        lse = m + jnp.log(jnp.sum(jnp.exp(x - m), axis=-1, keepdims=True))
        per_pos = lse * jnp.sum(t, axis=-1, keepdims=True) \
            - jnp.sum(t * x, axis=-1, keepdims=True)                  # (block_b, T, 1)
    else:
        # SoftCrossEntropyLoss(softmax=False): -(t * log(x)).sum(-1)
        per_pos = -jnp.sum(t * jnp.log(x), axis=-1, keepdims=True)    # (block_b, T, 1)

    # where-select (not multiply) so NaN/Inf from padded / out-of-bounds rows is
    # discarded rather than propagated.
    valid = mask_ref[...] != 0.0                                      # (block_b, T, 1)
    part = jnp.sum(jnp.where(valid, per_pos, 0.0))                    # scalar f32

    # Lane-dense (1, 8, 128) output block, filled by a cheap scalar broadcast.
    out_ref[...] = jnp.full(out_ref.shape, part, dtype=jnp.float32)


def _pick_block_b(B, T, C, itemsize):
    """Sequences per block: ~2 MiB per input block (x2 inputs x2 pipeline buffers
    ~= 8 MiB of VMEM), comfortably inside every generation's scoped budget."""
    bytes_per_seq = max(1, T * C * itemsize)
    bt = (2 * 1024 * 1024) // bytes_per_seq
    return int(max(1, min(B, bt)))


def soft_cross_entropy(logits, targets, lengths, *, softmax=True, block_b=None):
    """SoftCrossEntropyLoss(reduction='mean') over the flattened valid positions
    (equivalent to the PyTorch flatten-then-mean, computed as masked sum / count)."""
    B, T, C = logits.shape
    lengths = lengths.astype(jnp.int32)

    bt = block_b if block_b is not None else _pick_block_b(
        B, T, C, jnp.dtype(logits.dtype).itemsize)
    bt = int(max(1, min(B, bt)))
    G = (B + bt - 1) // bt
    B_pad = G * bt

    # Per-position validity mask.  Count is exact (sum of min(len, T)) and is
    # computed here, not in the kernel.
    pos = jax.lax.broadcasted_iota(jnp.int32, (B, T), 1)
    mask = (pos < lengths[:, None]).astype(jnp.float32)               # (B, T)
    denom = jnp.sum(mask)
    mask_p = jnp.pad(mask, ((0, B_pad - B), (0, 0)))[:, :, None]      # (B_pad, T, 1)

    kernel = functools.partial(_soft_ce_kernel, softmax=softmax)
    parts = pl.pallas_call(
        kernel,
        out_shape=jax.ShapeDtypeStruct((G, 8, 128), jnp.float32),
        grid=(G,),
        in_specs=[
            pl.BlockSpec((bt, T, C), lambda g: (g, 0, 0)),
            pl.BlockSpec((bt, T, C), lambda g: (g, 0, 0)),
            pl.BlockSpec((bt, T, 1), lambda g: (g, 0, 0)),
        ],
        out_specs=pl.BlockSpec((1, 8, 128), lambda g: (g, 0, 0)),
        compiler_params=pltpu.CompilerParams(
            dimension_semantics=("parallel",),
            vmem_limit_bytes=32 * 1024 * 1024,
        ),
    )(logits, targets, mask_p)

    # Final tiny reduce in JAX.  0/0 -> NaN, matching torch mean() over an empty
    # flattened selection when all lengths are zero.
    return parts[:, 0, 0].sum() / denom


def multi_losses(outputs, gt_labels, gt_lengths):
    """JAX port of MultiLosses.forward (one_hot=True path)."""

    def ce_loss(output):
        pt_logits = output['logits']
        weight = output['loss_weight']
        assert pt_logits.shape[0] % gt_labels.shape[0] == 0
        iter_size = pt_logits.shape[0] // gt_labels.shape[0]
        labels, lengths = gt_labels, gt_lengths
        if iter_size > 1:
            # Reference hard-codes repeat(3, 1, 1); use the computed iter_size so
            # every iter_size > 1 is consistent with the flatten logic.
            labels = jnp.tile(labels, (iter_size, 1, 1))
            lengths = jnp.tile(lengths, (iter_size,))
        softmax = output.get('nll') is None
        return soft_cross_entropy(pt_logits, labels, lengths,
                                  softmax=softmax) * weight

    if isinstance(outputs, (list, tuple)):
        # TODO(synk): _merge_list over multi-GPU result lists is host-side glue;
        # here each element is already a single merged dict.
        return sum(ce_loss(o) for o in outputs if o['loss_weight'] > 0.0)
    return ce_loss(outputs)


def _reference(logits, labels, lengths, weight, softmax=True):
    x = jnp.asarray(logits, jnp.float32)
    t = jnp.asarray(labels, jnp.float32)
    lp = jax.nn.log_softmax(x, axis=-1) if softmax else jnp.log(x)
    per = np.asarray(-(t * lp).sum(-1))                               # (B, T)
    B, T = per.shape
    m = np.arange(T)[None, :] < np.asarray(lengths)[:, None]
    return float(weight) * per[m].mean()


if __name__ == "__main__":
    key = jax.random.PRNGKey(0)
    k1, k2, k3, k4 = jax.random.split(key, 4)

    B, T, C = 2, 8, 32
    logits = jax.random.normal(k1, (B, T, C), dtype=jnp.float32)
    gt_idx = jax.random.randint(k2, (B, T), 0, C)
    gt_labels = jax.nn.one_hot(gt_idx, C, dtype=jnp.float32)          # one-hot targets
    gt_lengths = jnp.array([5, 8], dtype=jnp.int32)                   # valid steps/seq

    outputs = {'name': 'vision', 'logits': logits, 'loss_weight': 1.0}
    loss = jax.block_until_ready(multi_losses(outputs, gt_labels, gt_lengths))
    ref = _reference(logits, gt_labels, gt_lengths, 1.0)
    assert np.allclose(float(loss), ref, rtol=1e-5, atol=1e-5), (float(loss), ref)

    # list-of-outputs path (weighted sum, zero-weight entries skipped)
    loss2 = multi_losses(
        [{'name': 'vision', 'logits': logits, 'loss_weight': 1.0},
         {'name': 'lang', 'logits': logits * 0.5, 'loss_weight': 0.5},
         {'name': 'off', 'logits': logits, 'loss_weight': 0.0}],
        gt_labels, gt_lengths)
    loss2 = jax.block_until_ready(loss2)
    ref2 = (_reference(logits, gt_labels, gt_lengths, 1.0)
            + _reference(logits * 0.5, gt_labels, gt_lengths, 0.5))
    assert np.allclose(float(loss2), ref2, rtol=1e-5, atol=1e-5), (float(loss2), ref2)

    # multi-tile grid with a ragged (out-of-bounds padded) last block: B=5, block_b=2
    B2, T2, C2 = 5, 16, 64
    logits2 = jax.random.normal(k3, (B2, T2, C2), dtype=jnp.float32)
    labels2 = jax.nn.one_hot(jax.random.randint(k4, (B2, T2), 0, C2), C2,
                             dtype=jnp.float32)
    lengths2 = jnp.array([3, 16, 7, 1, 12], dtype=jnp.int32)
    got = jax.block_until_ready(
        soft_cross_entropy(logits2, labels2, lengths2, softmax=True, block_b=2))
    want = _reference(logits2, labels2, lengths2, 1.0)
    assert np.allclose(float(got), want, rtol=1e-5, atol=1e-5), (float(got), want)

    # softmax=False ("nll") path with probability inputs
    probs = jax.nn.softmax(logits, axis=-1)
    out_nll = {'name': 'nll_head', 'logits': probs, 'loss_weight': 1.0, 'nll': True}
    loss3 = jax.block_until_ready(multi_losses(out_nll, gt_labels, gt_lengths))
    ref3 = _reference(probs, gt_labels, gt_lengths, 1.0, softmax=False)
    assert np.allclose(float(loss3), ref3, rtol=1e-5, atol=1e-5), (float(loss3), ref3)

    print("KERNEL_OK")
</pallas_src>

<mosaic_0001>
module attributes {stable_mosaic.version = 11 : i64} {
  func.func @_soft_ce_kernel(%arg0: i32, %arg1: memref<2x8x32xf32, #tpu.memory_space<vmem>>, %arg2: memref<2x8x32xf32, #tpu.memory_space<vmem>>, %arg3: memref<2x8x1xf32, #tpu.memory_space<vmem>>, %arg4: memref<1x8x128xf32, #tpu.memory_space<vmem>>) attributes {dimension_semantics = [#tpu.dimension_semantics<parallel>], iteration_bounds = array<i64: 1>, scalar_prefetch = 0 : i64, scratch_operands = 0 : i64, tpu.core_type = #tpu.core_type<tc>, window_params = [{transform_indices = @transform_0, window_bounds = array<i64: 2, 8, 32>}, {transform_indices = @transform_1, window_bounds = array<i64: 2, 8, 32>}, {transform_indices = @transform_2, window_bounds = array<i64: 2, 8, 1>}, {transform_indices = @transform_3, window_bounds = array<i64: 1, 8, 128>}]} {
    %c0 = arith.constant 0 : index
    %c0_0 = arith.constant 0 : index
    %c0_1 = arith.constant 0 : index
    %0 = vector.load %arg1[%c0, %c0_0, %c0_1] : memref<2x8x32xf32, #tpu.memory_space<vmem>>, vector<2x8x32xf32>
    %c0_2 = arith.constant 0 : index
    %c0_3 = arith.constant 0 : index
    %c0_4 = arith.constant 0 : index
    %1 = vector.load %arg2[%c0_2, %c0_3, %c0_4] : memref<2x8x32xf32, #tpu.memory_space<vmem>>, vector<2x8x32xf32>
    %cst = arith.constant dense<0xFF800000> : vector<2x8xf32>
    %2 = vector.multi_reduction <maximumf>, %0, %cst [2] : vector<2x8x32xf32> to vector<2x8xf32>
    %3 = vector.shape_cast %2 : vector<2x8xf32> to vector<2x8x1xf32>
    %4 = vector.broadcast %3 : vector<2x8x1xf32> to vector<2x8x32xf32>
    %5 = arith.subf %0, %4 : vector<2x8x32xf32>
    %6 = math.exp %5 : vector<2x8x32xf32>
    %cst_5 = arith.constant dense<0.000000e+00> : vector<2x8xf32>
    %7 = vector.multi_reduction <add>, %6, %cst_5 [2] : vector<2x8x32xf32> to vector<2x8xf32>
    %8 = vector.shape_cast %7 : vector<2x8xf32> to vector<2x8x1xf32>
    %9 = math.log %8 : vector<2x8x1xf32>
    %10 = arith.addf %3, %9 : vector<2x8x1xf32>
    %cst_6 = arith.constant dense<0.000000e+00> : vector<2x8xf32>
    %11 = vector.multi_reduction <add>, %1, %cst_6 [2] : vector<2x8x32xf32> to vector<2x8xf32>
    %12 = vector.shape_cast %11 : vector<2x8xf32> to vector<2x8x1xf32>
    %13 = arith.mulf %10, %12 : vector<2x8x1xf32>
    %14 = arith.mulf %1, %0 : vector<2x8x32xf32>
    %cst_7 = arith.constant dense<0.000000e+00> : vector<2x8xf32>
    %15 = vector.multi_reduction <add>, %14, %cst_7 [2] : vector<2x8x32xf32> to vector<2x8xf32>
    %16 = vector.shape_cast %15 : vector<2x8xf32> to vector<2x8x1xf32>
    %17 = arith.subf %13, %16 : vector<2x8x1xf32>
    %c0_8 = arith.constant 0 : index
    %c0_9 = arith.constant 0 : index
    %c0_10 = arith.constant 0 : index
    %18 = vector.load %arg3[%c0_8, %c0_9, %c0_10] : memref<2x8x1xf32, #tpu.memory_space<vmem>>, vector<2x8x1xf32>
    %cst_11 = arith.constant 0.000000e+00 : f32
    %19 = vector.broadcast %cst_11 : f32 to vector<2x8x1xf32>
    %20 = arith.cmpf one, %18, %19 : vector<2x8x1xf32>
    %cst_12 = arith.constant 0.000000e+00 : f32
    %21 = vector.broadcast %cst_12 : f32 to vector<2x8x1xf32>
    %22 = arith.select %20, %17, %21 : vector<2x8x1xi1>, vector<2x8x1xf32>
    %23 = vector.shape_cast %22 : vector<2x8x1xf32> to vector<1x2x8x1xf32>
    %cst_13 = arith.constant dense<0.000000e+00> : vector<1xf32>
    %24 = vector.multi_reduction <add>, %23, %cst_13 [1, 2, 3] : vector<1x2x8x1xf32> to vector<1xf32>
    %25 = vector.shape_cast %24 : vector<1xf32> to vector<1x1x1x1xf32>
    %26 = vector.extract %25[0, 0, 0, 0] : f32 from vector<1x1x1x1xf32>
    %27 = vector.broadcast %26 : f32 to vector<1x8x128xf32>
    %c0_14 = arith.constant 0 : index
    %c0_15 = arith.constant 0 : index
    %c0_16 = arith.constant 0 : index
    %28 = vector.load %arg4[%c0_14, %c0_15, %c0_16] : memref<1x8x128xf32, #tpu.memory_space<vmem>>, vector<1x8x128xf32>
    tpu.vector_store %arg4[%c0_14, %c0_15, %c0_16], %27 {strides = array<i32>} : memref<1x8x128xf32, #tpu.memory_space<vmem>>, vector<1x8x128xf32>,
    return
  }
  func.func @transform_0(%arg0: i32) -> (i32, i32, i32) {
    %c0_i32 = arith.constant 0 : i32
    %c0_i32_0 = arith.constant 0 : i32
    %c0_i32_1 = arith.constant 0 : i32
    return %arg0, %c0_i32, %c0_i32_0 : i32, i32, i32
  }
  func.func @transform_1(%arg0: i32) -> (i32, i32, i32) {
    %c0_i32 = arith.constant 0 : i32
    %c0_i32_0 = arith.constant 0 : i32
    %c0_i32_1 = arith.constant 0 : i32
    return %arg0, %c0_i32, %c0_i32_0 : i32, i32, i32
  }
  func.func @transform_2(%arg0: i32) -> (i32, i32, i32) {
    %c0_i32 = arith.constant 0 : i32
    %c0_i32_0 = arith.constant 0 : i32
    %c0_i32_1 = arith.constant 0 : i32
    return %arg0, %c0_i32, %c0_i32_0 : i32, i32, i32
  }
  func.func @transform_3(%arg0: i32) -> (i32, i32, i32) {
    %c0_i32 = arith.constant 0 : i32
    %c0_i32_0 = arith.constant 0 : i32
    %c0_i32_1 = arith.constant 0 : i32
    return %arg0, %c0_i32, %c0_i32_0 : i32, i32, i32
  }
}

</mosaic_0001>

<bundles_post_ra>
// kernel: tpu_custom_call.1
= control target key start
LH: loop header
LB: loop body
LE: loop exit
PB: predicated region body
PF: predicated region fallthrough
CT: control target
= control target key end

     0   :  { %8 = vsyncpa [#allocation3], 0  ;;  %s242_s0 = inlined_call_operand.vmem [shape: f32[2,8,32], index: 0, kind: input, shape index: {}]   ;;  %s243_s1 = inlined_call_operand.hbm [shape: f32[2,8,32], index: 1, kind: input, shape index: {}]   ;;  %s244_s2 = inlined_call_operand.vmem [shape: f32[2,8,1], index: 2, kind: input, shape index: {}]   ;;  %s245_s3 = inlined_call_operand.hbm [shape: f32[1,8,128], index: 3, kind: output, shape index: {}]  }
   0x1   :  { %9 = vsyncpa [#allocation4], 0  ;;  %s174_s12 = smov [#allocation2]   ;;  %s126_s16 = scalar_lea.hbm %s243_s1, 256 }
   0x2   :  { %s17_s13 = sshll.u32 %s174_s12, 4  ;;  %p127_p0 = scmp.ne.s32.totalorder %s243_s1, %s126_s16  ;;  %s18_s13 = int_to_ptr.vmem [resolvable:$true] %s17_s13 }
   0x3   :  { %p130_p1 = scmp.lt.u32.totalorder %s126_s16, %s243_s1 }
   0x5   :  { %p132_p2 = pnand %p130_p1, %p127_p0 }
   0x7   :  { %135 = shalt.err (!%p132_p2)
}
   0x8   :  { %s136_s21 = scalar_lea.vmem %s18_s13, 256  ;;  %p141_p4 = scmp.lt.s32.totalorder %s18_s13, %s18_s13 }
   0x9   :  { %p137_p3 = scmp.ne.s32.totalorder %s18_s13, %s136_s21  ;;  %p142_p5 = scmp.lt.s32.totalorder %s136_s21, %s136_s21 }
   0xb   :  { %p143_p6 = por %p142_p5, %p141_p4 }
   0xd   :  { %p144_p7 = pnand %p143_p6, %p137_p3 }
   0xf   :  { %147 = shalt.err (!%p144_p7)
}
  0x10   :  { %s175_s22 = smov 128   ;;  %s176_s23 = smov 8  }
  0x11   :  { %23 = dma.hbm_to_vmem [thread:$0]  %s243_s1, 256, %s18_s13, [#allocation3], %s175_s22, %s175_s22, %s176_s23  }
  0x12   :  { %170 = dma.done.wait [#allocation3], 256  }
  0x13   :  { %171 = vsyncadd [#allocation3], 4294967040  ;;  %vm33_vm0 = vcmask 261120   ;;  %v29_v0 = vld [vmem:[%s242_s0] sm:$0xff]  ;;  %v30_v1 = vld [vmem:[%s242_s0 + $0x8] sm:$0xff]  ;;  %vm82_vm3 = vcmask 7168  }
  0x14   :  { %v34_v2 = vsel %vm33_vm0, %v29_v0, -inf  ;;  %v37_v3 = vsel %vm33_vm0, %v30_v1, -inf  ;;  %v31_v4 = vld [vmem:[#allocation2] sm:$0xff]  ;;  %v32_v17 = vld [vmem:[#allocation2 + $0x8] sm:$0xff] }
  0x15   :  { %35 = vmax.xlane.f32.xlu0 %v34_v2  ;;  %v58_v5 = vsel %vm33_vm0, %v31_v4, 0.0  ;;  %v66_v6 = vmul.f32 %v31_v4, %v29_v0  ;;  %v61_v19 = vsel %vm33_vm0, %v32_v17, 0.0  ;;  %v67_v20 = vmul.f32 %v32_v17, %v30_v1  ;;  %v76_v33 = vld [vmem:[%s244_s2] sm:$0xff]  ;;  %v77_v36 = vld [vmem:[%s244_s2 + $0x8] sm:$0xff]  ;;  %s177_s2 = smov [#allocation5]  }
  0x16   :  { %vm78_vm1 = vcmp.ne.f32.partialorder %v76_v33, 0.0  ;;  %vm79_vm2 = vcmp.ne.f32.partialorder %v77_v36, 0.0  ;;  %s103_s5 = sshll.u32 %s177_s2, 4  ;;  %s104_s5 = int_to_ptr.vmem [resolvable:$true] %s103_s5 }
  0x17   :  { %v68_v7 = vsel %vm33_vm0, %v66_v6, 0.0  ;;  %v71_v21 = vsel %vm33_vm0, %v67_v20, 0.0  ;;  %s148_s7 = scalar_lea.vmem %s104_s5, 128  ;;  %p153_p9 = scmp.lt.s32.totalorder %s104_s5, %s104_s5 }
  0x18   :  { %p149_p8 = scmp.ne.s32.totalorder %s104_s5, %s148_s7  ;;  %p154_p10 = scmp.lt.s32.totalorder %s148_s7, %s148_s7 }
  0x19   :  { %38 = vmax.xlane.f32.xlu0 %v37_v3 }
  0x1a   :  { %p155_p11 = por %p154_p10, %p153_p9 }
  0x1c   :  { %p156_p12 = pnand %p155_p11, %p149_p8 }
  0x1d   :  { %59 = vadd.xlane.f32.xlu0 %v58_v5 }
  0x21   :  { %69 = vadd.xlane.f32.xlu0 %v68_v7 }
  0xa2   :  { %v36_v8 = vpop.xlane.xlu0 %35 }
  0xa3   :  { %v40_v9 = vsub.f32 %v29_v0, %v36_v8 }
  0xa5   :  { %v42_v10 = vmul.f32 1.442695, %v40_v9 }
  0xa6   :  { %v39_v11 = vpop.xlane.xlu0 %38 }
  0xa7   :  { %118 = vpow2.f32 %v42_v10  ;;  %v41_v12 = vsub.f32 %v30_v1, %v39_v11 }
  0xa9   :  { %v44_v13 = vmul.f32 1.442695, %v41_v12 }
  0xaa   :  { %v60_v24 = vpop.xlane.xlu0 %59 }
  0xab   :  { %120 = vpow2.f32 %v44_v13 }
  0xae   :  { %v70_v30 = vpop.xlane.xlu0 %69 }
  0xb1   :  { %v119_v14 = vpop.eup %118 }
  0xb2   :  { %v46_v15 = vsel %vm33_vm0, %v119_v14, 0.0 }
  0xb3   :  { %47 = vadd.xlane.f32.xlu1 %v46_v15 }
  0xb5   :  { %v121_v16 = vpop.eup %120 }
  0xb6   :  { %v49_v18 = vsel %vm33_vm0, %v121_v16, 0.0 }
  0xb7   :  { %50 = vadd.xlane.f32.xlu1 %v49_v18 }
  0xbb   :  { %62 = vadd.xlane.f32.xlu1 %v61_v19 }
  0xbf   :  { %72 = vadd.xlane.f32.xlu1 %v71_v21 }
 0x140   :  { %v48_v22 = vpop.xlane.xlu1 %47 }
 0x141   :  { %122 = vlog2.f32 %v48_v22 }
 0x144   :  { %v51_v23 = vpop.xlane.xlu1 %50 }
 0x145   :  { %124 = vlog2.f32 %v51_v23 }
 0x148   :  { %v63_v27 = vpop.xlane.xlu1 %62 }
 0x14b   :  { %v123_v25 = vpop.eup %122 }
 0x14c   :  { %v53_v26 = vmul.f32 0.6931472, %v123_v25  ;;  %v73_v37 = vpop.xlane.xlu1 %72 }
 0x14e   :  { %v56_v28 = vadd.f32 %v53_v26, %v36_v8 }
 0x14f   :  { %v125_v29 = vpop.eup %124 }
 0x150   :  { %v55_v31 = vmul.f32 0.6931472, %v125_v29  ;;  %v64_v32 = vmul.f32 %v60_v24, %v56_v28 }
 0x152   :  { %v57_v34 = vadd.f32 %v55_v31, %v39_v11  ;;  %v74_v35 = vsub.f32 %v64_v32, %v70_v30 }
 0x154   :  { %v65_v38 = vmul.f32 %v63_v27, %v57_v34  ;;  %v80_v39 = vsel %vm78_vm1, %v74_v35, 0.0 }
 0x155   :  { %v83_v42 = vsel %vm82_vm3, %v80_v39, 0.0 }
 0x156   :  { %v75_v40 = vsub.f32 %v65_v38, %v73_v37 }
 0x158   :  { %v81_v41 = vsel %vm79_vm2, %v75_v40, 0.0 }
 0x159   :  { %v84_v43 = vsel %vm82_vm3, %v81_v41, 0.0 }
 0x15a   :  { %v85_v44 = vadd.f32 %v84_v43, %v83_v42 }
 0x15c   :  { %86 = vadd.xlane.f32.xlu0 %v85_v44 }
 0x1e9   :  { %v87_v45 = vpop.xlane.xlu0 %86 }
 0x1ea   :  { %v88_v46 = vrot.slane %v87_v45, 4 }
 0x1ec   :  { %v89_v47 = vadd.f32 %v88_v46, %v87_v45 }
 0x1ee   :  { %v90_v48 = vrot.slane %v89_v47, 2 }
 0x1f0   :  { %v91_v49 = vadd.f32 %v90_v48, %v89_v47 }
 0x1f2   :  { %v92_v50 = vrot.slane %v91_v49, 1 }
 0x1f4   :  { %v93_v51 = vadd.f32 %v92_v50, %v91_v49 }
 0x1f6   :  { %112 = vpush %v93_v51 }
 0x227   :  { %s113_s6 = spop %112 }
 0x228   :  { %v95_v52 = vstv %s113_s6 }
 0x229   :  { %96 = vst [vmem:[#allocation5] sm:$0xff] %v95_v52 }
 0x22a   :  { %159 = shalt.err (!%p156_p12)
}
 0x22b   :  { %s160_s10 = scalar_lea.hbm %s245_s3, 128 }
 0x22c   :  { %p161_p13 = scmp.ne.s32.totalorder %s245_s3, %s160_s10  ;;  %p164_p0 = scmp.lt.u32.totalorder %s160_s10, %s245_s3 }
 0x22e   :  { %p166_p1 = pnand %p164_p0, %p161_p13 }
 0x230   :  { %169 = shalt.err (!%p166_p1)
}
 0x231   :  { %106 = dma.vmem_to_hbm [thread:$0]  %s104_s5, 128, %s245_s3, [#allocation4]  }
 0x232   :  { %172 = dma.done.wait [#allocation4], 128  }
 0x233   :  { %173 = vsyncadd [#allocation4], 4294967168 }
 0x234   :  { %110 = vsyncpa [#allocation3], 1 }
 0x235   :  { %111 = vsyncpa [#allocation4], 1 }

</bundles_post_ra>
